<compile_context>
chip_gen: v6e
topology: v6e:2x2x1
jax: 0.10.0
libtpu: 0.0.40
codegen_flags: <defaults>
</compile_context>

<pallas_src>
import jax
import jax.numpy as jnp
from jax import lax
from jax.experimental import pallas as pl
from jax.experimental.pallas import tpu as pltpu


def downsampling_forward(x, weight, bias, *, images_per_block=1):
    """MaxPool2d(kernel=2, stride=2) followed by Conv2d(C_in->C_out, k=1, bias).

    x:      (N, C_in, H, W)     float32, NCHW (PyTorch layout)
    weight: (C_out, C_in, 1, 1) float32, PyTorch OIHW
    bias:   (C_out,)            float32
    returns (N, C_out, H//2, W//2)
    """
    N, C_in, H, W = x.shape
    C_out = weight.shape[0]
    assert weight.shape == (C_out, C_in, 1, 1), weight.shape
    assert H % 2 == 0 and W % 2 == 0, (H, W)
    Ho, Wo = H // 2, W // 2

    BN = images_per_block
    assert N % BN == 0, (N, BN)
    R_in = BN * C_in * Ho      # slab rows per grid step (input side)
    R_out = BN * C_out * Ho    # slab rows per grid step (output side)

    def kernel(w_sm, b_sm, sel_ref, x_ref, o_ref):
        # x_ref block: (1, R_in, 2W).  Row r = (nb*C_in + c)*Ho + i holds image
        # rows 2i and 2i+1 of channel c of image nb, concatenated along lanes.
        xk = x_ref[0].astype(jnp.float32)                 # (R_in, 2W)

        # 1) Vertical max: rows 2i vs 2i+1 -> HW/2 compares per channel (VPU).
        v = jnp.maximum(xk[:, :W], xk[:, W:])             # (R_in, W)
        # 2) Horizontal +1 compare on the already-halved data.
        m = jnp.maximum(v[:, :W - 1], v[:, 1:])           # (R_in, W-1)
        # 3) Stride-2 column compaction via a tiny 0/1 selector (exact at
        #    HIGHEST; the huge (HW, HWo) selector of v1 is gone).
        pooled = jnp.dot(m, sel_ref[...],
                         preferred_element_type=jnp.float32,
                         precision=lax.Precision.HIGHEST)  # (R_in, Wo)

        # 4) 1x1 conv as an unrolled VPU FMA loop with scalar weights from
        #    SMEM (MXU left idle on purpose: C_in=4, C_out=8 is <1% MXU util).
        for nb in range(BN):
            for o in range(C_out):
                r0 = (nb * C_in) * Ho
                acc = pooled[r0:r0 + Ho, :] * w_sm[o, 0]
                for c in range(1, C_in):
                    rc = (nb * C_in + c) * Ho
                    acc = acc + pooled[rc:rc + Ho, :] * w_sm[o, c]
                acc = acc + b_sm[o]
                q0 = (nb * C_out + o) * Ho
                o_ref[0, q0:q0 + Ho, :] = acc.astype(o_ref.dtype)

    # Free (row-major) reshapes only -- no HBM transposes.
    xr = x.reshape(N // BN, R_in, 2 * W)
    w2 = weight.reshape(C_out, C_in).astype(jnp.float32)   # SMEM scalars
    b1 = bias.astype(jnp.float32)                          # SMEM scalars

    # Tiny column selector: picks lanes w = 2*q out of the horizontal-max slab.
    sel = (jnp.arange(W - 1)[:, None] == 2 * jnp.arange(Wo)[None, :]
           ).astype(jnp.float32)                           # (W-1, Wo)

    out = pl.pallas_call(
        kernel,
        out_shape=jax.ShapeDtypeStruct((N // BN, R_out, Wo), x.dtype),
        grid=(N // BN,),
        in_specs=[
            pl.BlockSpec(memory_space=pltpu.MemorySpace.SMEM),      # conv weight
            pl.BlockSpec(memory_space=pltpu.MemorySpace.SMEM),      # conv bias
            pl.BlockSpec((W - 1, Wo), lambda n: (0, 0)),            # column selector
            pl.BlockSpec((1, R_in, 2 * W), lambda n: (n, 0, 0)),    # image slab
        ],
        out_specs=pl.BlockSpec((1, R_out, Wo), lambda n: (n, 0, 0)),
        compiler_params=pltpu.CompilerParams(
            dimension_semantics=("parallel",),       # megacore over batch on v7x
            vmem_limit_bytes=32 * 1024 * 1024),
    )(w2, b1, sel, xr)

    # Free row-major reshape back to NCHW.
    return out.reshape(N, C_out, Ho, Wo)


def downsampling_reference(x, weight, bias):
    """Pure-JAX reference matching the PyTorch module."""
    N, C, H, W = x.shape
    pooled = jnp.max(x.reshape(N, C, H // 2, 2, W // 2, 2), axis=(3, 5))
    w2 = weight.reshape(weight.shape[0], C)
    out = jnp.einsum("oc,nchw->nohw", w2, pooled,
                     precision=lax.Precision.HIGHEST)
    return out + bias.reshape(1, -1, 1, 1)


if __name__ == "__main__":
    key = jax.random.PRNGKey(0)
    kx, kw, kb = jax.random.split(key, 3)

    N, C_in, C_out, H, W = 2, 4, 8, 16, 16
    x = jax.random.normal(kx, (N, C_in, H, W), dtype=jnp.float32)

    # PyTorch-style Conv2d(1x1) init: uniform(+-1/sqrt(fan_in)), fan_in = C_in.
    bound = 1.0 / jnp.sqrt(jnp.float32(C_in))
    weight = jax.random.uniform(kw, (C_out, C_in, 1, 1), jnp.float32,
                                -bound, bound)
    bias = jax.random.uniform(kb, (C_out,), jnp.float32, -bound, bound)

    out = downsampling_forward(x, weight, bias)
    out = jax.block_until_ready(out)

    ref = downsampling_reference(x, weight, bias)
    assert out.shape == (N, C_out, H // 2, W // 2)
    err = jnp.max(jnp.abs(out - ref))
    assert jnp.allclose(out, ref, atol=1e-4, rtol=1e-4), f"max abs err {err}"

    print("KERNEL_OK")
</pallas_src>

<mosaic_0001>
module attributes {stable_mosaic.version = 11 : i64} {
  func.func @kernel(%arg0: i32, %arg1: memref<8x4xf32, #tpu.memory_space<smem>>, %arg2: memref<8xf32, #tpu.memory_space<smem>>, %arg3: memref<15x8xf32, #tpu.memory_space<vmem>>, %arg4: memref<1x32x32xf32, #tpu.memory_space<vmem>>, %arg5: memref<1x64x8xf32, #tpu.memory_space<vmem>>) attributes {dimension_semantics = [#tpu.dimension_semantics<parallel>], iteration_bounds = array<i64: 2>, scalar_prefetch = 0 : i64, scratch_operands = 0 : i64, tpu.core_type = #tpu.core_type<tc>, window_params = [{transform_indices = @transform_0, window_bounds = array<i64: 8, 4>}, {transform_indices = @transform_1, window_bounds = array<i64: 8>}, {pipeline_mode = #tpu.pipeline_mode<synchronous>, transform_indices = @transform_2, window_bounds = array<i64: 15, 8>}, {transform_indices = @transform_3, window_bounds = array<i64: 1, 32, 32>}, {transform_indices = @transform_4, window_bounds = array<i64: 1, 64, 8>}]} {
    %c0 = arith.constant 0 : index
    %c0_0 = arith.constant 0 : index
    %c0_1 = arith.constant 0 : index
    %0 = vector.load %arg4[%c0, %c0_0, %c0_1] : memref<1x32x32xf32, #tpu.memory_space<vmem>>, vector<1x32x32xf32>
    %1 = vector.shape_cast %0 : vector<1x32x32xf32> to vector<32x32xf32>
    %2 = vector.extract_strided_slice %1 {offsets = [0, 0], sizes = [32, 16], strides = [1, 1]} : vector<32x32xf32> to vector<32x16xf32>
    %3 = vector.extract_strided_slice %1 {offsets = [0, 16], sizes = [32, 16], strides = [1, 1]} : vector<32x32xf32> to vector<32x16xf32>
    %4 = arith.maximumf %2, %3 : vector<32x16xf32>
    %5 = vector.extract_strided_slice %4 {offsets = [0, 0], sizes = [32, 15], strides = [1, 1]} : vector<32x16xf32> to vector<32x15xf32>
    %6 = vector.extract_strided_slice %4 {offsets = [0, 1], sizes = [32, 15], strides = [1, 1]} : vector<32x16xf32> to vector<32x15xf32>
    %7 = arith.maximumf %5, %6 : vector<32x15xf32>
    %c0_2 = arith.constant 0 : index
    %c0_3 = arith.constant 0 : index
    %8 = vector.load %arg3[%c0_2, %c0_3] : memref<15x8xf32, #tpu.memory_space<vmem>>, vector<15x8xf32>
    %cst = arith.constant dense<0.000000e+00> : vector<32x8xf32>
    %9 = tpu.matmul %7, %8, %cst {dimension_numbers = #tpu.dot_dimension_numbers<[1], [0], [0], [1], [0, 0, 1, 1], [], []>, precision = #tpu.contract_precision<fp32>} : vector<32x15xf32>, vector<15x8xf32>, vector<32x8xf32> -> vector<32x8xf32>
    %10 = vector.extract_strided_slice %9 {offsets = [0, 0], sizes = [8, 8], strides = [1, 1]} : vector<32x8xf32> to vector<8x8xf32>
    %c0_4 = arith.constant 0 : index
    %c0_5 = arith.constant 0 : index
    %11 = memref.load %arg1[%c0_4, %c0_5] : memref<8x4xf32, #tpu.memory_space<smem>>
    %12 = vector.broadcast %11 : f32 to vector<8x8xf32>
    %13 = arith.mulf %10, %12 : vector<8x8xf32>
    %14 = vector.extract_strided_slice %9 {offsets = [8, 0], sizes = [8, 8], strides = [1, 1]} : vector<32x8xf32> to vector<8x8xf32>
    %c0_6 = arith.constant 0 : index
    %c1 = arith.constant 1 : index
    %15 = memref.load %arg1[%c0_6, %c1] : memref<8x4xf32, #tpu.memory_space<smem>>
    %16 = vector.broadcast %15 : f32 to vector<8x8xf32>
    %17 = arith.mulf %14, %16 : vector<8x8xf32>
    %18 = arith.addf %13, %17 : vector<8x8xf32>
    %19 = vector.extract_strided_slice %9 {offsets = [16, 0], sizes = [8, 8], strides = [1, 1]} : vector<32x8xf32> to vector<8x8xf32>
    %c0_7 = arith.constant 0 : index
    %c2 = arith.constant 2 : index
    %20 = memref.load %arg1[%c0_7, %c2] : memref<8x4xf32, #tpu.memory_space<smem>>
    %21 = vector.broadcast %20 : f32 to vector<8x8xf32>
    %22 = arith.mulf %19, %21 : vector<8x8xf32>
    %23 = arith.addf %18, %22 : vector<8x8xf32>
    %24 = vector.extract_strided_slice %9 {offsets = [24, 0], sizes = [8, 8], strides = [1, 1]} : vector<32x8xf32> to vector<8x8xf32>
    %c0_8 = arith.constant 0 : index
    %c3 = arith.constant 3 : index
    %25 = memref.load %arg1[%c0_8, %c3] : memref<8x4xf32, #tpu.memory_space<smem>>
    %26 = vector.broadcast %25 : f32 to vector<8x8xf32>
    %27 = arith.mulf %24, %26 : vector<8x8xf32>
    %28 = arith.addf %23, %27 : vector<8x8xf32>
    %c0_9 = arith.constant 0 : index
    %29 = memref.load %arg2[%c0_9] : memref<8xf32, #tpu.memory_space<smem>>
    %30 = vector.broadcast %29 : f32 to vector<8x8xf32>
    %31 = arith.addf %28, %30 : vector<8x8xf32>
    %c0_10 = arith.constant 0 : index
    %c0_11 = arith.constant 0 : index
    %c0_12 = arith.constant 0 : index
    %32 = vector.load %arg5[%c0_10, %c0_11, %c0_12] : memref<1x64x8xf32, #tpu.memory_space<vmem>>, vector<1x8x8xf32>
    %33 = vector.shape_cast %32 : vector<1x8x8xf32> to vector<8x8xf32>
    %34 = vector.shape_cast %31 : vector<8x8xf32> to vector<1x8x8xf32>
    tpu.vector_store %arg5[%c0_10, %c0_11, %c0_12], %34 {strides = array<i32>} : memref<1x64x8xf32, #tpu.memory_space<vmem>>, vector<1x8x8xf32>,
    %35 = vector.extract_strided_slice %9 {offsets = [0, 0], sizes = [8, 8], strides = [1, 1]} : vector<32x8xf32> to vector<8x8xf32>
    %c1_13 = arith.constant 1 : index
    %c0_14 = arith.constant 0 : index
    %36 = memref.load %arg1[%c1_13, %c0_14] : memref<8x4xf32, #tpu.memory_space<smem>>
    %37 = vector.broadcast %36 : f32 to vector<8x8xf32>
    %38 = arith.mulf %35, %37 : vector<8x8xf32>
    %39 = vector.extract_strided_slice %9 {offsets = [8, 0], sizes = [8, 8], strides = [1, 1]} : vector<32x8xf32> to vector<8x8xf32>
    %c1_15 = arith.constant 1 : index
    %c1_16 = arith.constant 1 : index
    %40 = memref.load %arg1[%c1_15, %c1_16] : memref<8x4xf32, #tpu.memory_space<smem>>
    %41 = vector.broadcast %40 : f32 to vector<8x8xf32>
    %42 = arith.mulf %39, %41 : vector<8x8xf32>
    %43 = arith.addf %38, %42 : vector<8x8xf32>
    %44 = vector.extract_strided_slice %9 {offsets = [16, 0], sizes = [8, 8], strides = [1, 1]} : vector<32x8xf32> to vector<8x8xf32>
    %c1_17 = arith.constant 1 : index
    %c2_18 = arith.constant 2 : index
    %45 = memref.load %arg1[%c1_17, %c2_18] : memref<8x4xf32, #tpu.memory_space<smem>>
    %46 = vector.broadcast %45 : f32 to vector<8x8xf32>
    %47 = arith.mulf %44, %46 : vector<8x8xf32>
    %48 = arith.addf %43, %47 : vector<8x8xf32>
    %49 = vector.extract_strided_slice %9 {offsets = [24, 0], sizes = [8, 8], strides = [1, 1]} : vector<32x8xf32> to vector<8x8xf32>
    %c1_19 = arith.constant 1 : index
    %c3_20 = arith.constant 3 : index
    %50 = memref.load %arg1[%c1_19, %c3_20] : memref<8x4xf32, #tpu.memory_space<smem>>
    %51 = vector.broadcast %50 : f32 to vector<8x8xf32>
    %52 = arith.mulf %49, %51 : vector<8x8xf32>
    %53 = arith.addf %48, %52 : vector<8x8xf32>
    %c1_21 = arith.constant 1 : index
    %54 = memref.load %arg2[%c1_21] : memref<8xf32, #tpu.memory_space<smem>>
    %55 = vector.broadcast %54 : f32 to vector<8x8xf32>
    %56 = arith.addf %53, %55 : vector<8x8xf32>
    %c0_22 = arith.constant 0 : index
    %c8 = arith.constant 8 : index
    %c0_23 = arith.constant 0 : index
    %57 = vector.load %arg5[%c0_22, %c8, %c0_23] : memref<1x64x8xf32, #tpu.memory_space<vmem>>, vector<1x8x8xf32>
    %58 = vector.shape_cast %57 : vector<1x8x8xf32> to vector<8x8xf32>
    %59 = vector.shape_cast %56 : vector<8x8xf32> to vector<1x8x8xf32>
    tpu.vector_store %arg5[%c0_22, %c8, %c0_23], %59 {strides = array<i32>} : memref<1x64x8xf32, #tpu.memory_space<vmem>>, vector<1x8x8xf32>,
    %60 = vector.extract_strided_slice %9 {offsets = [0, 0], sizes = [8, 8], strides = [1, 1]} : vector<32x8xf32> to vector<8x8xf32>
    %c2_24 = arith.constant 2 : index
    %c0_25 = arith.constant 0 : index
    %61 = memref.load %arg1[%c2_24, %c0_25] : memref<8x4xf32, #tpu.memory_space<smem>>
    %62 = vector.broadcast %61 : f32 to vector<8x8xf32>
    %63 = arith.mulf %60, %62 : vector<8x8xf32>
    %64 = vector.extract_strided_slice %9 {offsets = [8, 0], sizes = [8, 8], strides = [1, 1]} : vector<32x8xf32> to vector<8x8xf32>
    %c2_26 = arith.constant 2 : index
    %c1_27 = arith.constant 1 : index
    %65 = memref.load %arg1[%c2_26, %c1_27] : memref<8x4xf32, #tpu.memory_space<smem>>
    %66 = vector.broadcast %65 : f32 to vector<8x8xf32>
    %67 = arith.mulf %64, %66 : vector<8x8xf32>
    %68 = arith.addf %63, %67 : vector<8x8xf32>
    %69 = vector.extract_strided_slice %9 {offsets = [16, 0], sizes = [8, 8], strides = [1, 1]} : vector<32x8xf32> to vector<8x8xf32>
    %c2_28 = arith.constant 2 : index
    %c2_29 = arith.constant 2 : index
    %70 = memref.load %arg1[%c2_28, %c2_29] : memref<8x4xf32, #tpu.memory_space<smem>>
    %71 = vector.broadcast %70 : f32 to vector<8x8xf32>
    %72 = arith.mulf %69, %71 : vector<8x8xf32>
    %73 = arith.addf %68, %72 : vector<8x8xf32>
    %74 = vector.extract_strided_slice %9 {offsets = [24, 0], sizes = [8, 8], strides = [1, 1]} : vector<32x8xf32> to vector<8x8xf32>
    %c2_30 = arith.constant 2 : index
    %c3_31 = arith.constant 3 : index
    %75 = memref.load %arg1[%c2_30, %c3_31] : memref<8x4xf32, #tpu.memory_space<smem>>
    %76 = vector.broadcast %75 : f32 to vector<8x8xf32>
    %77 = arith.mulf %74, %76 : vector<8x8xf32>
    %78 = arith.addf %73, %77 : vector<8x8xf32>
    %c2_32 = arith.constant 2 : index
    %79 = memref.load %arg2[%c2_32] : memref<8xf32, #tpu.memory_space<smem>>
    %80 = vector.broadcast %79 : f32 to vector<8x8xf32>
    %81 = arith.addf %78, %80 : vector<8x8xf32>
    %c0_33 = arith.constant 0 : index
    %c16 = arith.constant 16 : index
    %c0_34 = arith.constant 0 : index
    %82 = vector.load %arg5[%c0_33, %c16, %c0_34] : memref<1x64x8xf32, #tpu.memory_space<vmem>>, vector<1x8x8xf32>
    %83 = vector.shape_cast %82 : vector<1x8x8xf32> to vector<8x8xf32>
    %84 = vector.shape_cast %81 : vector<8x8xf32> to vector<1x8x8xf32>
    tpu.vector_store %arg5[%c0_33, %c16, %c0_34], %84 {strides = array<i32>} : memref<1x64x8xf32, #tpu.memory_space<vmem>>, vector<1x8x8xf32>,
    %85 = vector.extract_strided_slice %9 {offsets = [0, 0], sizes = [8, 8], strides = [1, 1]} : vector<32x8xf32> to vector<8x8xf32>
    %c3_35 = arith.constant 3 : index
    %c0_36 = arith.constant 0 : index
    %86 = memref.load %arg1[%c3_35, %c0_36] : memref<8x4xf32, #tpu.memory_space<smem>>
    %87 = vector.broadcast %86 : f32 to vector<8x8xf32>
    %88 = arith.mulf %85, %87 : vector<8x8xf32>
    %89 = vector.extract_strided_slice %9 {offsets = [8, 0], sizes = [8, 8], strides = [1, 1]} : vector<32x8xf32> to vector<8x8xf32>
    %c3_37 = arith.constant 3 : index
    %c1_38 = arith.constant 1 : index
    %90 = memref.load %arg1[%c3_37, %c1_38] : memref<8x4xf32, #tpu.memory_space<smem>>
    %91 = vector.broadcast %90 : f32 to vector<8x8xf32>
    %92 = arith.mulf %89, %91 : vector<8x8xf32>
    %93 = arith.addf %88, %92 : vector<8x8xf32>
    %94 = vector.extract_strided_slice %9 {offsets = [16, 0], sizes = [8, 8], strides = [1, 1]} : vector<32x8xf32> to vector<8x8xf32>
    %c3_39 = arith.constant 3 : index
    %c2_40 = arith.constant 2 : index
    %95 = memref.load %arg1[%c3_39, %c2_40] : memref<8x4xf32, #tpu.memory_space<smem>>
    %96 = vector.broadcast %95 : f32 to vector<8x8xf32>
    %97 = arith.mulf %94, %96 : vector<8x8xf32>
    %98 = arith.addf %93, %97 : vector<8x8xf32>
    %99 = vector.extract_strided_slice %9 {offsets = [24, 0], sizes = [8, 8], strides = [1, 1]} : vector<32x8xf32> to vector<8x8xf32>
    %c3_41 = arith.constant 3 : index
    %c3_42 = arith.constant 3 : index
    %100 = memref.load %arg1[%c3_41, %c3_42] : memref<8x4xf32, #tpu.memory_space<smem>>
    %101 = vector.broadcast %100 : f32 to vector<8x8xf32>
    %102 = arith.mulf %99, %101 : vector<8x8xf32>
    %103 = arith.addf %98, %102 : vector<8x8xf32>
    %c3_43 = arith.constant 3 : index
    %104 = memref.load %arg2[%c3_43] : memref<8xf32, #tpu.memory_space<smem>>
    %105 = vector.broadcast %104 : f32 to vector<8x8xf32>
    %106 = arith.addf %103, %105 : vector<8x8xf32>
    %c0_44 = arith.constant 0 : index
    %c24 = arith.constant 24 : index
    %c0_45 = arith.constant 0 : index
    %107 = vector.load %arg5[%c0_44, %c24, %c0_45] : memref<1x64x8xf32, #tpu.memory_space<vmem>>, vector<1x8x8xf32>
    %108 = vector.shape_cast %107 : vector<1x8x8xf32> to vector<8x8xf32>
    %109 = vector.shape_cast %106 : vector<8x8xf32> to vector<1x8x8xf32>
    tpu.vector_store %arg5[%c0_44, %c24, %c0_45], %109 {strides = array<i32>} : memref<1x64x8xf32, #tpu.memory_space<vmem>>, vector<1x8x8xf32>,
    %110 = vector.extract_strided_slice %9 {offsets = [0, 0], sizes = [8, 8], strides = [1, 1]} : vector<32x8xf32> to vector<8x8xf32>
    %c4 = arith.constant 4 : index
    %c0_46 = arith.constant 0 : index
    %111 = memref.load %arg1[%c4, %c0_46] : memref<8x4xf32, #tpu.memory_space<smem>>
    %112 = vector.broadcast %111 : f32 to vector<8x8xf32>
    %113 = arith.mulf %110, %112 : vector<8x8xf32>
    %114 = vector.extract_strided_slice %9 {offsets = [8, 0], sizes = [8, 8], strides = [1, 1]} : vector<32x8xf32> to vector<8x8xf32>
    %c4_47 = arith.constant 4 : index
    %c1_48 = arith.constant 1 : index
    %115 = memref.load %arg1[%c4_47, %c1_48] : memref<8x4xf32, #tpu.memory_space<smem>>
    %116 = vector.broadcast %115 : f32 to vector<8x8xf32>
    %117 = arith.mulf %114, %116 : vector<8x8xf32>
    %118 = arith.addf %113, %117 : vector<8x8xf32>
    %119 = vector.extract_strided_slice %9 {offsets = [16, 0], sizes = [8, 8], strides = [1, 1]} : vector<32x8xf32> to vector<8x8xf32>
    %c4_49 = arith.constant 4 : index
    %c2_50 = arith.constant 2 : index
    %120 = memref.load %arg1[%c4_49, %c2_50] : memref<8x4xf32, #tpu.memory_space<smem>>
    %121 = vector.broadcast %120 : f32 to vector<8x8xf32>
    %122 = arith.mulf %119, %121 : vector<8x8xf32>
    %123 = arith.addf %118, %122 : vector<8x8xf32>
    %124 = vector.extract_strided_slice %9 {offsets = [24, 0], sizes = [8, 8], strides = [1, 1]} : vector<32x8xf32> to vector<8x8xf32>
    %c4_51 = arith.constant 4 : index
    %c3_52 = arith.constant 3 : index
    %125 = memref.load %arg1[%c4_51, %c3_52] : memref<8x4xf32, #tpu.memory_space<smem>>
    %126 = vector.broadcast %125 : f32 to vector<8x8xf32>
    %127 = arith.mulf %124, %126 : vector<8x8xf32>
    %128 = arith.addf %123, %127 : vector<8x8xf32>
    %c4_53 = arith.constant 4 : index
    %129 = memref.load %arg2[%c4_53] : memref<8xf32, #tpu.memory_space<smem>>
    %130 = vector.broadcast %129 : f32 to vector<8x8xf32>
    %131 = arith.addf %128, %130 : vector<8x8xf32>
    %c0_54 = arith.constant 0 : index
    %c32 = arith.constant 32 : index
    %c0_55 = arith.constant 0 : index
    %132 = vector.load %arg5[%c0_54, %c32, %c0_55] : memref<1x64x8xf32, #tpu.memory_space<vmem>>, vector<1x8x8xf32>
    %133 = vector.shape_cast %132 : vector<1x8x8xf32> to vector<8x8xf32>
    %134 = vector.shape_cast %131 : vector<8x8xf32> to vector<1x8x8xf32>
    tpu.vector_store %arg5[%c0_54, %c32, %c0_55], %134 {strides = array<i32>} : memref<1x64x8xf32, #tpu.memory_space<vmem>>, vector<1x8x8xf32>,
    %135 = vector.extract_strided_slice %9 {offsets = [0, 0], sizes = [8, 8], strides = [1, 1]} : vector<32x8xf32> to vector<8x8xf32>
    %c5 = arith.constant 5 : index
    %c0_56 = arith.constant 0 : index
    %136 = memref.load %arg1[%c5, %c0_56] : memref<8x4xf32, #tpu.memory_space<smem>>
    %137 = vector.broadcast %136 : f32 to vector<8x8xf32>
    %138 = arith.mulf %135, %137 : vector<8x8xf32>
    %139 = vector.extract_strided_slice %9 {offsets = [8, 0], sizes = [8, 8], strides = [1, 1]} : vector<32x8xf32> to vector<8x8xf32>
    %c5_57 = arith.constant 5 : index
    %c1_58 = arith.constant 1 : index
    %140 = memref.load %arg1[%c5_57, %c1_58] : memref<8x4xf32, #tpu.memory_space<smem>>
    %141 = vector.broadcast %140 : f32 to vector<8x8xf32>
    %142 = arith.mulf %139, %141 : vector<8x8xf32>
    %143 = arith.addf %138, %142 : vector<8x8xf32>
    %144 = vector.extract_strided_slice %9 {offsets = [16, 0], sizes = [8, 8], strides = [1, 1]} : vector<32x8xf32> to vector<8x8xf32>
    %c5_59 = arith.constant 5 : index
    %c2_60 = arith.constant 2 : index
    %145 = memref.load %arg1[%c5_59, %c2_60] : memref<8x4xf32, #tpu.memory_space<smem>>
    %146 = vector.broadcast %145 : f32 to vector<8x8xf32>
    %147 = arith.mulf %144, %146 : vector<8x8xf32>
    %148 = arith.addf %143, %147 : vector<8x8xf32>
    %149 = vector.extract_strided_slice %9 {offsets = [24, 0], sizes = [8, 8], strides = [1, 1]} : vector<32x8xf32> to vector<8x8xf32>
    %c5_61 = arith.constant 5 : index
    %c3_62 = arith.constant 3 : index
    %150 = memref.load %arg1[%c5_61, %c3_62] : memref<8x4xf32, #tpu.memory_space<smem>>
    %151 = vector.broadcast %150 : f32 to vector<8x8xf32>
    %152 = arith.mulf %149, %151 : vector<8x8xf32>
    %153 = arith.addf %148, %152 : vector<8x8xf32>
    %c5_63 = arith.constant 5 : index
    %154 = memref.load %arg2[%c5_63] : memref<8xf32, #tpu.memory_space<smem>>
    %155 = vector.broadcast %154 : f32 to vector<8x8xf32>
    %156 = arith.addf %153, %155 : vector<8x8xf32>
    %c0_64 = arith.constant 0 : index
    %c40 = arith.constant 40 : index
    %c0_65 = arith.constant 0 : index
    %157 = vector.load %arg5[%c0_64, %c40, %c0_65] : memref<1x64x8xf32, #tpu.memory_space<vmem>>, vector<1x8x8xf32>
    %158 = vector.shape_cast %157 : vector<1x8x8xf32> to vector<8x8xf32>
    %159 = vector.shape_cast %156 : vector<8x8xf32> to vector<1x8x8xf32>
    tpu.vector_store %arg5[%c0_64, %c40, %c0_65], %159 {strides = array<i32>} : memref<1x64x8xf32, #tpu.memory_space<vmem>>, vector<1x8x8xf32>,
    %160 = vector.extract_strided_slice %9 {offsets = [0, 0], sizes = [8, 8], strides = [1, 1]} : vector<32x8xf32> to vector<8x8xf32>
    %c6 = arith.constant 6 : index
    %c0_66 = arith.constant 0 : index
    %161 = memref.load %arg1[%c6, %c0_66] : memref<8x4xf32, #tpu.memory_space<smem>>
    %162 = vector.broadcast %161 : f32 to vector<8x8xf32>
    %163 = arith.mulf %160, %162 : vector<8x8xf32>
    %164 = vector.extract_strided_slice %9 {offsets = [8, 0], sizes = [8, 8], strides = [1, 1]} : vector<32x8xf32> to vector<8x8xf32>
    %c6_67 = arith.constant 6 : index
    %c1_68 = arith.constant 1 : index
    %165 = memref.load %arg1[%c6_67, %c1_68] : memref<8x4xf32, #tpu.memory_space<smem>>
    %166 = vector.broadcast %165 : f32 to vector<8x8xf32>
    %167 = arith.mulf %164, %166 : vector<8x8xf32>
    %168 = arith.addf %163, %167 : vector<8x8xf32>
    %169 = vector.extract_strided_slice %9 {offsets = [16, 0], sizes = [8, 8], strides = [1, 1]} : vector<32x8xf32> to vector<8x8xf32>
    %c6_69 = arith.constant 6 : index
    %c2_70 = arith.constant 2 : index
    %170 = memref.load %arg1[%c6_69, %c2_70] : memref<8x4xf32, #tpu.memory_space<smem>>
    %171 = vector.broadcast %170 : f32 to vector<8x8xf32>
    %172 = arith.mulf %169, %171 : vector<8x8xf32>
    %173 = arith.addf %168, %172 : vector<8x8xf32>
    %174 = vector.extract_strided_slice %9 {offsets = [24, 0], sizes = [8, 8], strides = [1, 1]} : vector<32x8xf32> to vector<8x8xf32>
    %c6_71 = arith.constant 6 : index
    %c3_72 = arith.constant 3 : index
    %175 = memref.load %arg1[%c6_71, %c3_72] : memref<8x4xf32, #tpu.memory_space<smem>>
    %176 = vector.broadcast %175 : f32 to vector<8x8xf32>
    %177 = arith.mulf %174, %176 : vector<8x8xf32>
    %178 = arith.addf %173, %177 : vector<8x8xf32>
    %c6_73 = arith.constant 6 : index
    %179 = memref.load %arg2[%c6_73] : memref<8xf32, #tpu.memory_space<smem>>
    %180 = vector.broadcast %179 : f32 to vector<8x8xf32>
    %181 = arith.addf %178, %180 : vector<8x8xf32>
    %c0_74 = arith.constant 0 : index
    %c48 = arith.constant 48 : index
    %c0_75 = arith.constant 0 : index
    %182 = vector.load %arg5[%c0_74, %c48, %c0_75] : memref<1x64x8xf32, #tpu.memory_space<vmem>>, vector<1x8x8xf32>
    %183 = vector.shape_cast %182 : vector<1x8x8xf32> to vector<8x8xf32>
    %184 = vector.shape_cast %181 : vector<8x8xf32> to vector<1x8x8xf32>
    tpu.vector_store %arg5[%c0_74, %c48, %c0_75], %184 {strides = array<i32>} : memref<1x64x8xf32, #tpu.memory_space<vmem>>, vector<1x8x8xf32>,
    %185 = vector.extract_strided_slice %9 {offsets = [0, 0], sizes = [8, 8], strides = [1, 1]} : vector<32x8xf32> to vector<8x8xf32>
    %c7 = arith.constant 7 : index
    %c0_76 = arith.constant 0 : index
    %186 = memref.load %arg1[%c7, %c0_76] : memref<8x4xf32, #tpu.memory_space<smem>>
    %187 = vector.broadcast %186 : f32 to vector<8x8xf32>
    %188 = arith.mulf %185, %187 : vector<8x8xf32>
    %189 = vector.extract_strided_slice %9 {offsets = [8, 0], sizes = [8, 8], strides = [1, 1]} : vector<32x8xf32> to vector<8x8xf32>
    %c7_77 = arith.constant 7 : index
    %c1_78 = arith.constant 1 : index
    %190 = memref.load %arg1[%c7_77, %c1_78] : memref<8x4xf32, #tpu.memory_space<smem>>
    %191 = vector.broadcast %190 : f32 to vector<8x8xf32>
    %192 = arith.mulf %189, %191 : vector<8x8xf32>
    %193 = arith.addf %188, %192 : vector<8x8xf32>
    %194 = vector.extract_strided_slice %9 {offsets = [16, 0], sizes = [8, 8], strides = [1, 1]} : vector<32x8xf32> to vector<8x8xf32>
    %c7_79 = arith.constant 7 : index
    %c2_80 = arith.constant 2 : index
    %195 = memref.load %arg1[%c7_79, %c2_80] : memref<8x4xf32, #tpu.memory_space<smem>>
    %196 = vector.broadcast %195 : f32 to vector<8x8xf32>
    %197 = arith.mulf %194, %196 : vector<8x8xf32>
    %198 = arith.addf %193, %197 : vector<8x8xf32>
    %199 = vector.extract_strided_slice %9 {offsets = [24, 0], sizes = [8, 8], strides = [1, 1]} : vector<32x8xf32> to vector<8x8xf32>
    %c7_81 = arith.constant 7 : index
    %c3_82 = arith.constant 3 : index
    %200 = memref.load %arg1[%c7_81, %c3_82] : memref<8x4xf32, #tpu.memory_space<smem>>
    %201 = vector.broadcast %200 : f32 to vector<8x8xf32>
    %202 = arith.mulf %199, %201 : vector<8x8xf32>
    %203 = arith.addf %198, %202 : vector<8x8xf32>
    %c7_83 = arith.constant 7 : index
    %204 = memref.load %arg2[%c7_83] : memref<8xf32, #tpu.memory_space<smem>>
    %205 = vector.broadcast %204 : f32 to vector<8x8xf32>
    %206 = arith.addf %203, %205 : vector<8x8xf32>
    %c0_84 = arith.constant 0 : index
    %c56 = arith.constant 56 : index
    %c0_85 = arith.constant 0 : index
    %207 = vector.load %arg5[%c0_84, %c56, %c0_85] : memref<1x64x8xf32, #tpu.memory_space<vmem>>, vector<1x8x8xf32>
    %208 = vector.shape_cast %207 : vector<1x8x8xf32> to vector<8x8xf32>
    %209 = vector.shape_cast %206 : vector<8x8xf32> to vector<1x8x8xf32>
    tpu.vector_store %arg5[%c0_84, %c56, %c0_85], %209 {strides = array<i32>} : memref<1x64x8xf32, #tpu.memory_space<vmem>>, vector<1x8x8xf32>,
    return
  }
  func.func @transform_0(%arg0: i32) -> (i32, i32) {
    %c0_i32 = arith.constant 0 : i32
    %c0_i32_0 = arith.constant 0 : i32
    %c0_i32_1 = arith.constant 0 : i32
    return %c0_i32, %c0_i32_0 : i32, i32
  }
  func.func @transform_1(%arg0: i32) -> i32 {
    %c0_i32 = arith.constant 0 : i32
    %c0_i32_0 = arith.constant 0 : i32
    return %c0_i32 : i32
  }
  func.func @transform_2(%arg0: i32) -> (i32, i32) {
    %c0_i32 = arith.constant 0 : i32
    %c0_i32_0 = arith.constant 0 : i32
    %c0_i32_1 = arith.constant 0 : i32
    return %c0_i32, %c0_i32_0 : i32, i32
  }
  func.func @transform_3(%arg0: i32) -> (i32, i32, i32) {
    %c0_i32 = arith.constant 0 : i32
    %c0_i32_0 = arith.constant 0 : i32
    %c0_i32_1 = arith.constant 0 : i32
    return %arg0, %c0_i32, %c0_i32_0 : i32, i32, i32
  }
  func.func @transform_4(%arg0: i32) -> (i32, i32, i32) {
    %c0_i32 = arith.constant 0 : i32
    %c0_i32_0 = arith.constant 0 : i32
    %c0_i32_1 = arith.constant 0 : i32
    return %arg0, %c0_i32, %c0_i32_0 : i32, i32, i32
  }
}

</mosaic_0001>

<bundles_post_ra>
// kernel: tpu_custom_call.1
= control target key start
LH: loop header
LB: loop body
LE: loop exit
PB: predicated region body
PF: predicated region fallthrough
CT: control target
= control target key end

     0   :  { %s1868_s0 = inlined_call_operand.vmem [shape: f32[8,4], index: 0, kind: input, shape index: {}]   ;;  %s1869_s1 = inlined_call_operand.vmem [shape: f32[8], index: 1, kind: input, shape index: {}]   ;;  %s1870_s2 = inlined_call_operand.vmem [shape: f32[15,8], index: 2, kind: input, shape index: {}]   ;;  %s1871_s3 = inlined_call_operand.hbm [shape: f32[2,32,32], index: 3, kind: input, shape index: {}]   ;;  %s1872_s4 = inlined_call_operand.vmem [shape: f32[2,64,8], index: 4, kind: output, shape index: {}]  }
   0x1   :  { %1889 = sst [smem:[#allocation24_spill]] %s1868_s0 }
   0x2   :  { %1890 = sst [smem:[#allocation25_spill]] %s1869_s1 }
   0x3   :  { %1891 = sst [smem:[#allocation26_spill]] %s1870_s2 }
   0x4   :  { %1892 = sst [smem:[#allocation27_spill]] %s1871_s3 }
   0x5   :  { %1893 = sst [smem:[#allocation28_spill]] %s1872_s4 }
   0x6   :  { %9 = vsyncpa [#allocation4], 0 }
   0x7   :  { %10 = vsyncpa [#allocation6], 0 }
   0x8   :  { %11 = vsyncpa [#allocation3], 0 }
   0x9   :  { %13 = vsyncpa [#allocation3 + $0x1], 0  ;;  %s1488_s15 = smov 0   ;;  %s1490_s16 = smov 0  }
   0xa   :  { %s1492_s17 = smov 0   ;;  %s1494_s18 = smov 0  }
   0xb LB: > { %1894 = sst [smem:[#allocation11_spill]] %s1446_s16  ;;  %s1507_s19 = sadd.s32 4294967295, %s1454_s18   ;;  %s1454_s18 = sphi %s1494_s18, %s1933_s18   ;;  %s1450_s17 = sphi %s1492_s17, %s1936_s17   ;;  %s1446_s16 = sphi %s1490_s16, %s1935_s16   ;;  %s1442_s15 = sphi %s1488_s15, %s1934_s15  }
   0xc   : > { %1895 = sst [smem:[#allocation12_spill]] %s1450_s17  ;;  %s1510_s20 = sadd.s32 1, %s1454_s18  }
   0xd   : > { %1896 = sst [smem:[#allocation13_spill]] %s1507_s19  ;;  %s86_s21 = ssub.s32 %s1454_s18, %s1510_s20 }
   0xe   : > { %1897 = sst [smem:[#allocation14_spill]] %s1510_s20  ;;  %s89_s22 = sadd.s32 1, %s1450_s17 }
   0xf   : > { %p87_p0 = scmp.eq.s32.totalorder %s86_s21, 0  ;;  %p96_p1 = scmp.ne.s32.totalorder %s1450_s17, %s1446_s16 }
  0x10   : > { %p97_p2 = scmp.eq.s32.totalorder %s1454_s18, 0  ;;  %p102_p3 = scmp.ne.s32.totalorder %s1446_s16, %s1442_s15 }
  0x11   : > { %s1520_s23 = scalar_select %p87_p0, %s1450_s17, %s89_s22  }
  0x12   : > { %p1522_p4 = por %p97_p2, %p96_p1  ;;  %p1873_p5 = scmp.eq.s32.totalorder %s1507_s19, 0 }
  0x13   : > { %1898 = sst [smem:[#allocation15_spill]] %s1520_s23  ;;  %p1139_p6 = scmp.ge.s32.totalorder %s1454_s18, 1 }
  0x14   : > { %p139_p7 = scmp.lt.s32.totalorder %s1454_s18, 3  ;;  %p1531_p8 = por %p1873_p5, %p102_p3 }
  0x15   : > { %s1902_s0 = sld [smem:[#allocation24_spill]]  ;;  %p1313_p11 = scmp.lt.s32.totalorder %s1454_s18, 2 }
  0x16   : > { %s1900_s25 = scalar_select %p1531_p8, 1, 0 }
  0x17   : > { %p1535_p9 = pnand %p1139_p6, %p139_p7  ;;  %s1903_s1 = sld [smem:[#allocation25_spill]] }
  0x18   : > { %p1556_p13 = pnand %p1313_p11, %p1522_p4  ;;  %s177_s9 = sand.u32 1, %s1450_s17  }
  0x19   : > { %s1901_s26 = scalar_select %p1535_p9, 1, 0 }
  0x1a   : > { %p1300_p10 = pneg %p1535_p9 }
  0x1b   : > { %s152_s29 = sshll.u32 %s1902_s0, 4  ;;  %s153_s29 = int_to_ptr.vmem [resolvable:$true] %s152_s29 }
  0x1c   : > { %p1550_p12 = pnand %p1300_p10, %p1873_p5  ;;  %s1354_s10 = scalar_lea.vmem %s153_s29, 128 }
  0x1d   : > { %s163_s6 = sshll.u32 %s1903_s1, 4  ;;  %p1355_p0 = scmp.ne.s32.totalorder %s153_s29, %s1354_s10  ;;  %s164_s6 = int_to_ptr.vmem [resolvable:$true] %s163_s6 }
  0x1e   : > { %s1905_s8 = scalar_select %p1556_p13, 1, 0 }
  0x1f   : > { %p1356_p1 = pneg %p1550_p12  ;;  %p1362_p6 = scmp.lt.s32.totalorder %s153_s29, %s153_s29 }
  0x20   : > { %p1363_p7 = scmp.lt.s32.totalorder %s1354_s10, %s1354_s10 }
  0x21   : > { %p1357_p2 = pnand %p1356_p1, %p1355_p0 }
  0x22   : > { %p1364_p10 = por %p1363_p7, %p1362_p6 }
  0x23   : > { %p1358_p3 = pneg %p1357_p2 }
  0x25   : > { %p1365_p5 = pnand %p1364_p10, %p1358_p3 }
  0x27   : > { %1368 = shalt.err (!%p1365_p5)
}
  0x28   : > { %s1456_s11 = smov [#allocation2]   ;;  %s1369_s12 = scalar_lea.vmem %s164_s6, 16 }
  0x29   : > { %1303 = dma.vmem_to_smem (!%p1550_p12), %s153_s29, 128, %s1456_s11, [#allocation4]  }
  0x2a   : > { %p1370_p4 = scmp.ne.s32.totalorder %s164_s6, %s1369_s12  ;;  %p1377_p9 = scmp.lt.s32.totalorder %s164_s6, %s164_s6 }
  0x2b   : > { %p1378_p13 = scmp.lt.s32.totalorder %s1369_s12, %s1369_s12 }
  0x2c   : > { %p1372_p11 = pnand %p1370_p4, %p1356_p1 }
  0x2d   : > { %p1379_p0 = por %p1378_p13, %p1377_p9 }
  0x2e   : > { %p1373_p8 = pneg %p1372_p11 }
  0x30   : > { %p1380_p2 = pnand %p1379_p0, %p1373_p8 }
  0x32   : > { %1383 = shalt.err (!%p1380_p2)
}
  0x33   : > { %s1457_s13 = smov [#allocation5]   ;;  %s1143_s14 = sshll.u32 %s177_s9, 5 }
  0x34   : > { %1306 = dma.vmem_to_smem (!%p1550_p12), %s164_s6, 16, %s1457_s13, [#allocation6]  }
  0x35   : > { %s1192_s15 = sshll.u32 %s1454_s18, 9  ;;  %s1906_s3 = sld [smem:[#allocation27_spill]] }
  0x36   : > { %s181_s27 = scalar_lea.vmem [#allocation7], %s1143_s14  ;;  %s1579_s29 = scalar_lea.sflag [#allocation3], %s177_s9 }
  0x37   : > { %s188_s28 = sshll.u32 %s181_s27, 4  ;;  %p1907_p8 = scmp.ne.s32.totalorder %s1905_s8, 0  ;;  %s1575_s28 = int_to_ptr.vmem [resolvable:$true] %s188_s28 }
  0x39   : > { %p1386_p9 = pneg %p1907_p8 }
  0x3b   : > { %s1573_s24 = scalar_lea.hbm %s1906_s3, %s1192_s15  ;;  %s1389_s6 = scalar_lea.hbm %s1906_s3, 1024 }
  0x3c   : > { %s1384_s30 = scalar_lea.hbm %s1573_s24, 512  ;;  %p1390_p1 = scmp.lt.s32.totalorder %s1573_s24, %s1906_s3 }
  0x3d   : > { %p1385_p5 = scmp.ne.s32.totalorder %s1573_s24, %s1384_s30  ;;  %p1391_p3 = scmp.lt.s32.totalorder %s1389_s6, %s1384_s30 }
  0x3f   : > { %p1387_p12 = pnand %p1386_p9, %p1385_p5  ;;  %p1392_p6 = por %p1391_p3, %p1390_p1 }
  0x41   : > { %p1388_p13 = pneg %p1387_p12 }
  0x43   : > { %p1393_p7 = pnand %p1392_p6, %p1388_p13 }
  0x45   : > { %1396 = shalt.err (!%p1393_p7)
}
  0x46   : > { %s1397_s9 = scalar_lea.vmem %s1575_s28, 512  ;;  %s1458_s11 = smov [#allocation7]  }
  0x47   : > { %p1398_p10 = scmp.ne.s32.totalorder %s1575_s28, %s1397_s9  ;;  %s1402_s12 = sshll.u32 %s1458_s11, 4  ;;  %s1403_s12 = int_to_ptr.vmem [resolvable:$false] %s1402_s12 }
  0x48   : > { %s1404_s13 = scalar_lea.vmem %s1403_s12, 1024  ;;  %p1405_p0 = scmp.lt.s32.totalorder %s1575_s28, %s1403_s12 }
  0x49   : > { %p1400_p4 = pnand %p1398_p10, %p1386_p9  ;;  %p1406_p2 = scmp.lt.s32.totalorder %s1404_s13, %s1397_s9 }
  0x4b   : > { %p1401_p11 = pneg %p1400_p4  ;;  %p1407_p5 = por %p1406_p2, %p1405_p0 }
  0x4d   : > { %p1408_p12 = pnand %p1407_p5, %p1401_p11 }
  0x4f   : > { %1411 = shalt.err (!%p1408_p12)
}
  0x50   : > { %s1459_s14 = smov 128   ;;  %s1460_s15 = smov 8  }
  0x51   : > { %1310 = dma.hbm_to_vmem [thread:$0]  (!%p1907_p8), %s1573_s24, 512, %s1575_s28, %s1579_s29, %s1459_s14, %s1459_s14, %s1460_s15  }
  0x52   : > { %p1908_p9 = scmp.ne.s32.totalorder %s1901_s26, 0 }
  0x54   : > { %200 = sbr.rel (%p1908_p9) target bundleno = 586 (0x24a), region = 36 }
  0x59   : > { %p1909_p13 = scmp.eq.s32.totalorder %s1507_s19, 0 }
  0x5b   : > { %1429 = dma.done.wait (%p1909_p13), [#allocation4], 128   ;;  %p1910_p1 = pmov %p1909_p13 }
  0x5d   : > { %1431 = vsyncadd (%p1910_p1), [#allocation4], 4294967168  ;;  %p1911_p3 = pmov %p1910_p1 }
  0x5e   : > { %p1912_p6 = pmov %p1910_p1 }
  0x5f   : > { %1433 = dma.done.wait (%p1911_p3), [#allocation6], 16  }
  0x60   : > { %1435 = vsyncadd (%p1912_p6), [#allocation6], 4294967280  ;;  %s210_s21 = sand.u32 1, %s1446_s16   ;;  %p1913_p8 = scmp.ne.s32.totalorder %s1900_s25, 0 }
  0x61   : > { %s1149_s8 = sshll.u32 %s210_s21, 5  ;;  %s211_s22 = scalar_lea.sflag [#allocation3], %s210_s21 }
  0x62   : > { %s214_s24 = scalar_lea.vmem [#allocation7], %s1149_s8 }
  0x63   : > { %1437 = dma.done.wait (%p1913_p8), %s211_s22, 512  }
  0x64   : > { %1439 = vsyncadd (%p1913_p8), %s211_s22, 4294966784 }
  0x65   : > { %219 = sfence }
  0x66   : > { %v245_v0 = vld [vmem:[%s214_s24] sm:$0xff]  ;;  %v247_v1 = vld [vmem:[%s214_s24 + $0x10] sm:$0xff]  ;;  %s1461_s26 = smov 112   ;;  %v246_v2 = vld [vmem:[%s214_s24 + $0x8] sm:$0xff]  ;;  %s1914_s2 = sld [smem:[#allocation26_spill]]  ;;  %vm304_vm0 = vcmask 1046528  }
  0x67   : > { %253 = vrot.lane.b32.xlu0 %v245_v0, %s1461_s26  ;;  %257 = vrot.lane.b32.xlu1 %v247_v1, %s1461_s26  ;;  %v248_v3 = vld [vmem:[%s214_s24 + $0x18] sm:$0xff]  ;;  %s1462_s30 = smov 127   ;;  %vm291_vm1 = vcmask 121856   ;;  %s1665_s18 = sld [smem:[#allocation2 + $0x1]]  ;;  %vm914_vm2 = vcmask 64512  }
  0x68   : > { %s1667_s5 = sld [smem:[#allocation2 + $0x81]] }
  0x69   : > { %s1669_s6 = sld [smem:[#allocation2 + $0x101]] }
  0x6a   : > { %s1671_s7 = sld [smem:[#allocation2 + $0x181]] }
  0x6b   : > { %255 = vrot.lane.b32.xlu0 %v246_v2, %s1461_s26  ;;  %259 = vrot.lane.b32.xlu1 %v248_v3, %s1461_s26  ;;  %s1673_s10 = sld [smem:[#allocation2 + $0x201]] }
  0x6c   : > { %v290_v4 = vld [vmem:[%s1914_s2 + $0x8] sm:$0x7f]  ;;  %v289_v7 = vld [vmem:[%s1914_s2] sm:$0xff]  ;;  %s1675_s9 = sld [smem:[#allocation2 + $0x281]] }
  0x6d   : > { %v306_v5 = vsel %vm304_vm0, %v290_v4, 0  ;;  %v1626_v9 = vand.u32 4294901760, %v289_v7  ;;  %s1677_s11 = sld [smem:[#allocation2 + $0x301]] }
  0x6e   : > { %v1618_v6 = vand.u32 4294901760, %v306_v5  ;;  %s1679_s12 = sld [smem:[#allocation2 + $0x381]] }
  0x6f   : > { %v1634_v11 = vsub.f32 %v289_v7, %v1626_v9  ;;  %1915 = sst [smem:[#allocation16_spill]] %s1669_s6  ;;  %v900_v7 = vstv %s1665_s18 }
  0x70   : > { %v1624_v8 = vsub.f32 %v306_v5, %v1618_v6  ;;  %1230 = vmatprep.subr.mxu0 %v1618_v6  ;;  %s1681_s13 = sld [smem:[#allocation2]] }
  0x71   : > { %1231 = vmatpush3.msra.mxu0 %v1618_v6  ;;  %v1641_v13 = vand.u32 4294901760, %v1634_v11  ;;  %1916 = sst [smem:[#allocation17_spill]] %s1673_s10 }
  0x72   : > { %v1631_v10 = vand.u32 4294901760, %v1624_v8  ;;  %1232 = vmatprep.subr.mxu0 %v1626_v9  ;;  %s1683_s14 = sld [smem:[#allocation2 + $0x80]] }
  0x73   : > { %1233 = vmatpush3.msra.mxu0 %v1626_v9  ;;  %v454_v15 = vsub.f32 %v1634_v11, %v1641_v13  ;;  %s1685_s15 = sld [smem:[#allocation2 + $0x100]] }
  0x74   : > { %v447_v12 = vsub.f32 %v1624_v8, %v1631_v10  ;;  %1250 = vmatprep.subr.mxu0 %v1624_v8  ;;  %1917 = sst [smem:[#allocation18_spill]] %s1679_s12 }
  0x75   : > { %v455_v16 = vand.u32 4294901760, %v454_v15  ;;  %s1687_s21 = sld [smem:[#allocation2 + $0x180]] }
  0x76   : > { %v448_v14 = vand.u32 4294901760, %v447_v12  ;;  %s1689_s8 = sld [smem:[#allocation2 + $0x200]]  ;;  %v958_v12 = vstv %s1671_s7 }
  0x77   : > { %s1691_s22 = sld [smem:[#allocation2 + $0x280]] }
  0x78   : > { %1240 = vmatprep.subr.mxu1 %v448_v14  ;;  %s1693_s24 = sld [smem:[#allocation2 + $0x300]] }
  0x79   : > { %1241 = vmatpush3.msra.mxu1 %v448_v14  ;;  %s1695_s26 = sld [smem:[#allocation2 + $0x380]] }
  0x7a   : > { %1242 = vmatprep.subr.mxu1 %v455_v16  ;;  %s1697_s27 = sld [smem:[#allocation2 + $0x3]] }
  0x7b   : > { %1243 = vmatpush3.msra.mxu1 %v455_v16  ;;  %s1699_s28 = sld [smem:[#allocation2 + $0x83]]  ;;  %v996_v16 = vstv %s1675_s9 }
  0x7c   : > { %1260 = vmatprep.subr.mxu1 %v1618_v6  ;;  %s1701_s25 = sld [smem:[#allocation2 + $0x103]] }
  0x7d   : > { %s1703_s29 = sld [smem:[#allocation2 + $0x183]] }
  0x7e   : > { %s1707_s0 = sld [smem:[#allocation2 + $0x283]] }
  0x7f   : > { %s1709_s1 = sld [smem:[#allocation2 + $0x303]] }
  0x80   : > { %s1711_s2 = sld [smem:[#allocation2 + $0x383]] }
  0x81   : > { %s1713_s3 = sld [smem:[#allocation2 + $0x2]] }
  0x82   : > { %s1715_s23 = sld [smem:[#allocation5]] }
  0x83   : > { %s1717_s17 = sld [smem:[#allocation2 + $0x82]] }
  0x84   : > { %s1719_s16 = sld [smem:[#allocation5 + $0x1]] }
  0x85   : > { %s1721_s20 = sld [smem:[#allocation2 + $0x102]] }
  0x86   : > { %s1723_s4 = sld [smem:[#allocation5 + $0x2]] }
  0x87   : > { %s1725_s19 = sld [smem:[#allocation2 + $0x182]] }
  0x88   : > { %1918 = sst [smem:[#allocation19_spill]] %s1715_s23 }
  0x89   : > { %1919 = sst [smem:[#allocation20_spill]] %s1717_s17 }
  0x8a   : > { %1920 = sst [smem:[#allocation21_spill]] %s1719_s16 }
  0x8b   : > { %s1727_s23 = sld [smem:[#allocation5 + $0x3]] }
  0x8c   : > { %s1731_s17 = sld [smem:[#allocation2 + $0x202]] }
  0x8d   : > { %1921 = sst [smem:[#allocation22_spill]] %s1725_s19 }
  0x8e   : > { %s1733_s16 = sld [smem:[#allocation5 + $0x4]] }
  0x8f   : > { %s1738_s19 = sld [smem:[#allocation2 + $0x282]] }
  0x92   : > { %1922 = sst [smem:[#allocation23_spill]] %s1731_s17 }
  0x93   : > { %s1742_s17 = sld [smem:[#allocation5 + $0x5]] }
  0xd9   : > { %v254_v17 = vpop.permute.xlu0 %253  ;;  %v258_v18 = vpop.permute.xlu1 %257 }
  0xda   : > { %v265_v19 = vmax.f32 %v245_v0, %v254_v17  ;;  %v267_v20 = vmax.f32 %v247_v1, %v258_v18  ;;  %v1015_v17 = vstv %s1677_s11  ;;  %v1034_v18 = vstv %s1679_s12  ;;  %s1759_s12 = sld [smem:[#allocation2 + $0x382]] }
  0xdc   : > { %273 = vrot.lane.b32.xlu0 %v265_v19, %s1462_s30 }
  0xdd   : > { %v256_v21 = vpop.permute.xlu0 %255  ;;  %v260_v22 = vpop.permute.xlu1 %259 }
  0xde   : > { %v266_v23 = vmax.f32 %v246_v2, %v256_v21  ;;  %v268_v24 = vmax.f32 %v248_v3, %v260_v22  ;;  %v917_v21 = vstv %s1683_s14  ;;  %v936_v22 = vstv %s1685_s15  ;;  %s1923_s14 = sld [smem:[#allocation19_spill]] }
  0xdf   : > { %s1924_s15 = sld [smem:[#allocation20_spill]] }
  0xe0   : > { %277 = vrot.lane.b32.xlu0 %v267_v20, %s1462_s30  ;;  %275 = vrot.lane.b32.xlu1 %v266_v23, %s1462_s30 }
  0xe4   : > { %279 = vrot.lane.b32.xlu1 %v268_v24, %s1462_s30  ;;  %s1705_s30 = sld [smem:[#allocation2 + $0x203]] }
 0x14e   : > { %v274_v25 = vpop.permute.xlu0 %273 }
 0x14f   : > { %v285_v26 = vmax.f32 %v265_v19, %v274_v25  ;;  %v897_v19 = vstv %s1681_s13  ;;  %v974_v25 = vstv %s1689_s8  ;;  %s1764_s13 = sld [smem:[#allocation5 + $0x7]] }
 0x150   : > { %s1926_s8 = sld [smem:[#allocation22_spill]] }
 0x151   : > { %v293_v27 = vsel %vm291_vm1, %v285_v26, 0  ;;  %v993_v26 = vstv %s1691_s22  ;;  %s1927_s22 = sld [smem:[#allocation23_spill]] }
 0x152   : > { %v375_v28 = vand.u32 4294901760, %v293_v27  ;;  %v276_v29 = vpop.permute.xlu1 %275  ;;  %v278_v30 = vpop.permute.xlu0 %277 }
 0x153   : > { %v286_v31 = vmax.f32 %v266_v23, %v276_v29  ;;  %v287_v32 = vmax.f32 %v267_v20, %v278_v30  ;;  %v955_v23 = vstv %s1687_s21  ;;  %v908_v30 = vstv %s1697_s27  ;;  %s1925_s21 = sld [smem:[#allocation21_spill]] }
 0x154   : > { %v376_v33 = vsub.f32 %v293_v27, %v375_v28  ;;  %1244 = vmatprep.mubr.f32.mxu1 %v375_v28  ;;  %v1012_v27 = vstv %s1693_s24 }
 0x155   : > { %v296_v34 = vsel %vm291_vm1, %v286_v31, 0  ;;  %v299_v35 = vsel %vm291_vm1, %v287_v32, 0  ;;  %v928_v31 = vstv %s1699_s28  ;;  %v947_v32 = vstv %s1701_s25 }
 0x156   : > { %v385_v36 = vand.u32 4294901760, %v296_v34  ;;  %v395_v37 = vand.u32 4294901760, %v299_v35  ;;  %v280_v38 = vpop.permute.xlu1 %279  ;;  %v377_v39 = vand.u32 4294901760, %v376_v33 }
 0x157   : > { %v288_v40 = vmax.f32 %v268_v24, %v280_v38  ;;  %v985_v38 = vstv %s1705_s30 }
 0x158   : > { %v386_v41 = vsub.f32 %v296_v34, %v385_v36  ;;  %v396_v42 = vsub.f32 %v299_v35, %v395_v37  ;;  %1245 = vmatmul.mubr.f32.vlgmr.msra.gmra.mxu1 %v385_v36  ;;  %v378_v43 = vsub.f32 %v376_v33, %v377_v39 }
 0x159   : > { %v302_v44 = vsel %vm291_vm1, %v288_v40, 0  ;;  %1247 = vmatprep.mubr.f32.mxu1 %v395_v37  ;;  %1261 = vmatpush3.msra.mxu1 %v1618_v6 }
 0x15a   : > { %v405_v45 = vand.u32 4294901760, %v302_v44  ;;  %v379_v46 = vand.u32 4294901760, %v378_v43  ;;  %1262 = vmatprep.subr.mxu1 %v1626_v9  ;;  %v387_v47 = vand.u32 4294901760, %v386_v41  ;;  %v397_v48 = vand.u32 4294901760, %v396_v42 }
 0x15b   : > { %1263 = vmatpush3.msra.mxu1 %v1626_v9 }
 0x15c   : > { %v406_v49 = vsub.f32 %v302_v44, %v405_v45  ;;  %1234 = vmatprep.mubr.f32.mxu0 %v379_v46  ;;  %1248 = vmatmul.mubr.f32.gmra.mxu1 %v405_v45  ;;  %v388_v50 = vsub.f32 %v386_v41, %v387_v47  ;;  %v398_v51 = vsub.f32 %v396_v42, %v397_v48  ;;  %v1042_v46 = vstv %s1711_s2  ;;  %s1932_s2 = sld [smem:[#allocation28_spill]] }
 0x15d   : > { %1264 = vmatprep.mubr.f32.mxu1 %v377_v39  ;;  %1280 = vmatprep.subr.mxu1 %v1618_v6 }
 0x15e   : > { %v389_v52 = vand.u32 4294901760, %v388_v50  ;;  %v399_v53 = vand.u32 4294901760, %v398_v51  ;;  %v407_v54 = vand.u32 4294901760, %v406_v49  ;;  %v924_v50 = vstv %s1924_s15 }
 0x15f   : > { %v932_v51 = vstv %s1925_s21 }
 0x160   : > { %1235 = vmatmul.mubr.f32.vlgmr.msra.gmra.mxu0 %v389_v52  ;;  %1265 = vmatmul.mubr.f32.vlgmr.msra.gmra.mxu1 %v387_v47  ;;  %v408_v55 = vsub.f32 %v406_v49, %v407_v54  ;;  %v904_v47 = vstv %s1713_s3 }
 0x161   : > { %1251 = vmatpush3.msra.mxu0 %v1624_v8  ;;  %1237 = vmatprep.mubr.f32.mxu0 %v399_v53  ;;  %v920_v8 = vstv %s1667_s5 }
 0x162   : > { %1267 = vmatprep.mubr.f32.mxu1 %v397_v48  ;;  %1252 = vmatprep.subr.mxu0 %v1634_v11  ;;  %v409_v56 = vand.u32 4294901760, %v408_v55  ;;  %v943_v55 = vstv %s1721_s20 }
 0x163   : > { %1253 = vmatpush3.msra.mxu0 %v1634_v11  ;;  %1281 = vmatpush3.msra.mxu1 %v1618_v6 }
 0x164   : > { %1238 = vmatmul.mubr.f32.gmra.mxu0 %v409_v56  ;;  %1268 = vmatmul.mubr.f32.gmra.mxu1 %v407_v54  ;;  %v951_v56 = vstv %s1723_s4 }
 0x165   : > { %1254 = vmatprep.mubr.f32.mxu0 %v376_v33  ;;  %1284 = vmatprep.mubr.f32.mxu1 %v375_v28 }
 0x166   : > { %1282 = vmatprep.subr.mxu1 %v1626_v9  ;;  %1270 = vmatprep.subr.mxu0 %v1631_v10 }
 0x167   : > { %1283 = vmatpush3.msra.mxu1 %v1626_v9  ;;  %v939_v9 = vstv %s1669_s6  ;;  %s1748_s6 = sld [smem:[#allocation2 + $0x302]] }
 0x168   : > { %1255 = vmatmul.mubr.f32.vlgmr.msra.gmra.mxu0 %v386_v41  ;;  %1285 = vmatmul.mubr.f32.vlgmr.msra.gmra.mxu1 %v385_v36  ;;  %v1004_v41 = vstv %s1707_s0 }
 0x169   : > { %1271 = vmatpush3.msra.mxu0 %v1631_v10  ;;  %1257 = vmatprep.mubr.f32.mxu0 %v396_v42  ;;  %v1023_v42 = vstv %s1709_s1 }
 0x16a   : > { %1287 = vmatprep.mubr.f32.mxu1 %v395_v37  ;;  %1272 = vmatprep.subr.mxu0 %v1641_v13 }
 0x16b   : > { %1273 = vmatpush3.msra.mxu0 %v1641_v13  ;;  %v977_v13 = vstv %s1673_s10  ;;  %s1753_s10 = sld [smem:[#allocation5 + $0x6]] }
 0x16c   : > { %1258 = vmatmul.mubr.f32.gmra.mxu0 %v406_v49  ;;  %1288 = vmatmul.mubr.f32.gmra.mxu1 %v405_v45  ;;  %v912_v49 = vstv %s1923_s14 }
 0x16d   : > { %1274 = vmatprep.mubr.f32.mxu0 %v375_v28  ;;  %v1031_v28 = vstv %s1695_s26  ;;  %s1930_s26 = sld [smem:[#allocation13_spill]] }
 0x170   : > { %1275 = vmatmul.mubr.f32.vlgmr.msra.gmra.mxu0 %v385_v36 }
 0x171   : > { %1277 = vmatprep.mubr.f32.mxu0 %v395_v37  ;;  %v966_v37 = vstv %s1703_s29 }
 0x173   : > { %p240_p7 = scmp.lt.s32.totalorder %s1930_s26, 1 }
 0x174   : > { %1278 = vmatmul.mubr.f32.gmra.mxu0 %v405_v45 }
 0x175   : > { %s1938_s26 = smov (!%p240_p7, %s1930_s26), 1 }
 0x176   : > { %s1193_s18 = sshll.u32 %s1938_s26, 6 }
 0x177   : > { %s244_s3 = scalar_lea.vmem %s1932_s2, %s1193_s18 }
 0x218   : > { %v1246_v57 = vpop.f32.mrf.mxu1 }
 0x21a   : > { %v492_v58 = vpop.f32.mrf.mxu1 }
 0x21c   : > { %v1249_v59 = vpop.f32.mrf.mxu1 }
 0x21e   : > { %v504_v60 = vpop.f32.mrf.mxu1 }
 0x220   : > { %v1236_v61 = vpop.f32.mrf.mxu0  ;;  %v1266_v62 = vpop.f32.mrf.mxu1 }
 0x221   : > { %v499_v5 = vadd.f32 %v1246_v57, %v1236_v61  ;;  %v962_v57 = vstv %s1926_s8  ;;  %v1000_v61 = vstv %s1738_s19 }
 0x222   : > { %v381_v63 = vpop.f32.mrf.mxu0  ;;  %v682_v0 = vpop.f32.mrf.mxu1 }
 0x223   : > { %v493_v10 = vadd.f32 %v492_v58, %v381_v63  ;;  %v970_v58 = vstv %s1727_s23 }
 0x224   : > { %v1239_v1 = vpop.f32.mrf.mxu0  ;;  %v1729_v3 = vpop.f32.mrf.mxu1 }
 0x225   : > { %v511_v33 = vadd.f32 %v1249_v59, %v1239_v1  ;;  %v981_v59 = vstv %s1927_s22  ;;  %v1008_v1 = vstv %s1742_s17 }
 0x226   : > { %v401_v2 = vpop.f32.mrf.mxu0  ;;  %v698_v14 = vpop.f32.mrf.mxu1 }
 0x227   : > { %v505_v34 = vadd.f32 %v504_v60, %v401_v2  ;;  %v989_v60 = vstv %s1733_s16  ;;  %v1019_v2 = vstv %s1748_s6 }
 0x228   : > { %v1256_v4 = vpop.f32.mrf.mxu0  ;;  %v1286_v35 = vpop.f32.mrf.mxu1 }
 0x229   : > { %v594_v11 = vadd.f32 %v1256_v4, %v499_v5  ;;  %v1027_v5 = vstv %s1753_s10 }
 0x22a   : > { %v586_v6 = vpop.f32.mrf.mxu0  ;;  %v874_v52 = vpop.f32.mrf.mxu1 }
 0x22b   : > { %v587_v20 = vadd.f32 %v586_v6, %v493_v10  ;;  %v691_v29 = vadd.f32 %v1266_v62, %v594_v11  ;;  %v1038_v6 = vstv %s1759_s12  ;;  %v1046_v10 = vstv %s1764_s13 }
 0x22c   : > { %v1259_v15 = vpop.f32.mrf.mxu0  ;;  %v1289_v11 = vpop.f32.mrf.mxu1 }
 0x22d   : > { %v683_v40 = vadd.f32 %v682_v0, %v587_v20  ;;  %v608_v43 = vadd.f32 %v1259_v15, %v511_v33 }
 0x22e   : > { %v600_v24 = vpop.f32.mrf.mxu0 }
 0x22f   : > { %v601_v44 = vadd.f32 %v600_v24, %v505_v34  ;;  %v707_v62 = vadd.f32 %v1729_v3, %v608_v43 }
 0x230   : > { %v1276_v36 = vpop.f32.mrf.mxu0 }
 0x231   : > { %v790_v39 = vadd.f32 %v1276_v36, %v691_v29  ;;  %v699_v63 = vadd.f32 %v698_v14, %v601_v44 }
 0x232   : > { %v783_v45 = vpop.f32.mrf.mxu0 }
 0x233   : > { %v784_v48 = vadd.f32 %v783_v45, %v683_v40  ;;  %v881_v53 = vadd.f32 %v1286_v35, %v790_v39  ;;  %v886_v45 = vpop.f32.mrf.mxu1 }
 0x234   : > { %v1279_v54 = vpop.f32.mrf.mxu0 }
 0x235   : > { %v875_v4 = vadd.f32 %v874_v52, %v784_v48  ;;  %v901_v15 = vmul.f32 %v900_v7, %v881_v53  ;;  %v921_v20 = vmul.f32 %v920_v8, %v881_v53  ;;  %v802_v24 = vadd.f32 %v1279_v54, %v707_v62 }
 0x236   : > { %v795_v0 = vpop.f32.mrf.mxu0  ;;  %v940_v43 = vmul.f32 %v939_v9, %v881_v53  ;;  %v959_v44 = vmul.f32 %v958_v12, %v881_v53  ;;  %v978_v7 = vmul.f32 %v977_v13, %v881_v53  ;;  %v997_v8 = vmul.f32 %v996_v16, %v881_v53 }
 0x237   : > { %v796_v3 = vadd.f32 %v795_v0, %v699_v63  ;;  %v898_v14 = vmul.f32 %v897_v19, %v875_v4  ;;  %v918_v29 = vmul.f32 %v917_v21, %v875_v4  ;;  %v937_v33 = vmul.f32 %v936_v22, %v875_v4 }
 0x238   : > { %v956_v34 = vmul.f32 %v955_v23, %v875_v4  ;;  %v975_v35 = vmul.f32 %v974_v25, %v875_v4  ;;  %v994_v36 = vmul.f32 %v993_v26, %v875_v4  ;;  %v1013_v39 = vmul.f32 %v1012_v27, %v875_v4 }
 0x239   : > { %v1032_v40 = vmul.f32 %v1031_v28, %v875_v4  ;;  %v1016_v19 = vmul.f32 %v1015_v17, %v881_v53  ;;  %v1035_v21 = vmul.f32 %v1034_v18, %v881_v53  ;;  %v902_v22 = vadd.f32 %v901_v15, %v898_v14 }
 0x23a   : > { %v922_v9 = vadd.f32 %v921_v20, %v918_v29  ;;  %v941_v12 = vadd.f32 %v940_v43, %v937_v33  ;;  %v960_v13 = vadd.f32 %v959_v44, %v956_v34  ;;  %v893_v16 = vadd.f32 %v1289_v11, %v802_v24 }
 0x23b   : > { %v887_v23 = vadd.f32 %v886_v45, %v796_v3  ;;  %v979_v25 = vadd.f32 %v978_v7, %v975_v35  ;;  %v998_v26 = vadd.f32 %v997_v8, %v994_v36  ;;  %v1017_v17 = vadd.f32 %v1016_v19, %v1013_v39 }
 0x23c   : > { %v1036_v27 = vadd.f32 %v1035_v21, %v1032_v40  ;;  %v909_v18 = vmul.f32 %v908_v30, %v893_v16  ;;  %v929_v28 = vmul.f32 %v928_v31, %v893_v16  ;;  %v948_v48 = vmul.f32 %v947_v32, %v893_v16 }
 0x23d   : > { %v967_v52 = vmul.f32 %v966_v37, %v893_v16  ;;  %v986_v53 = vmul.f32 %v985_v38, %v893_v16  ;;  %v1005_v54 = vmul.f32 %v1004_v41, %v893_v16  ;;  %v1024_v62 = vmul.f32 %v1023_v42, %v893_v16 }
 0x23e   : > { %v1043_v63 = vmul.f32 %v1042_v46, %v893_v16  ;;  %v905_v0 = vmul.f32 %v904_v47, %v887_v23  ;;  %v925_v30 = vmul.f32 %v924_v50, %v887_v23  ;;  %v944_v4 = vmul.f32 %v943_v55, %v887_v23 }
 0x23f   : > { %v963_v31 = vmul.f32 %v962_v57, %v887_v23  ;;  %v982_v11 = vmul.f32 %v981_v59, %v887_v23  ;;  %v1001_v32 = vmul.f32 %v1000_v61, %v887_v23  ;;  %v1020_v15 = vmul.f32 %v1019_v2, %v887_v23 }
 0x240   : > { %v1039_v37 = vmul.f32 %v1038_v6, %v887_v23  ;;  %v906_v20 = vadd.f32 %v905_v0, %v902_v22  ;;  %v926_v24 = vadd.f32 %v925_v30, %v922_v9  ;;  %v945_v38 = vadd.f32 %v944_v4, %v941_v12 }
 0x241   : > { %v964_v41 = vadd.f32 %v963_v31, %v960_v13  ;;  %v983_v42 = vadd.f32 %v982_v11, %v979_v25  ;;  %v1002_v46 = vadd.f32 %v1001_v32, %v998_v26  ;;  %v1021_v47 = vadd.f32 %v1020_v15, %v1017_v17 }
 0x242   : > { %v1040_v50 = vadd.f32 %v1039_v37, %v1036_v27  ;;  %v910_v55 = vadd.f32 %v909_v18, %v906_v20  ;;  %v930_v57 = vadd.f32 %v929_v28, %v926_v24  ;;  %v949_v59 = vadd.f32 %v948_v48, %v945_v38 }
 0x243   : > { %v968_v61 = vadd.f32 %v967_v52, %v964_v41  ;;  %v987_v2 = vadd.f32 %v986_v53, %v983_v42  ;;  %v1006_v6 = vadd.f32 %v1005_v54, %v1002_v46  ;;  %v1025_v3 = vadd.f32 %v1024_v62, %v1021_v47 }
 0x244   : > { %v1044_v14 = vadd.f32 %v1043_v63, %v1040_v50  ;;  %v913_v29 = vadd.f32 %v912_v49, %v910_v55  ;;  %v933_v33 = vadd.f32 %v932_v51, %v930_v57  ;;  %v952_v34 = vadd.f32 %v951_v56, %v949_v59 }
 0x245   : > { %v971_v35 = vadd.f32 %v970_v58, %v968_v61  ;;  %v990_v36 = vadd.f32 %v989_v60, %v987_v2  ;;  %v1009_v39 = vadd.f32 %v1008_v1, %v1006_v6  ;;  %v1028_v40 = vadd.f32 %v1027_v5, %v1025_v3 }
 0x246   : > { %v1047_v43 = vadd.f32 %v1046_v10, %v1044_v14  ;;  %915 = vst.msk [vmem:[%s244_s3] sm:$0xff] %vm914_vm2, %v913_v29  ;;  %934 = vst.msk [vmem:[%s244_s3 + $0x8] sm:$0xff] %vm914_vm2, %v933_v33 }
 0x247   : > { %953 = vst.msk [vmem:[%s244_s3 + $0x10] sm:$0xff] %vm914_vm2, %v952_v34  ;;  %972 = vst.msk [vmem:[%s244_s3 + $0x18] sm:$0xff] %vm914_vm2, %v971_v35 }
 0x248   : > { %991 = vst.msk [vmem:[%s244_s3 + $0x20] sm:$0xff] %vm914_vm2, %v990_v36  ;;  %1010 = vst.msk [vmem:[%s244_s3 + $0x28] sm:$0xff] %vm914_vm2, %v1009_v39 }
 0x249   : > { %1029 = vst.msk [vmem:[%s244_s3 + $0x30] sm:$0xff] %vm914_vm2, %v1028_v40  ;;  %1048 = vst.msk [vmem:[%s244_s3 + $0x38] sm:$0xff] %vm914_vm2, %v1047_v43 }
 0x24a PF: > { %s1933_s18 = sld [smem:[#allocation14_spill]] }
 0x24b   : > { %s1934_s15 = sld [smem:[#allocation11_spill]] }
 0x24c   : > { %s1935_s16 = sld [smem:[#allocation12_spill]] }
 0x24d   : > { %s1936_s17 = sld [smem:[#allocation15_spill]] }
 0x250   : > { %p16_p10 = scmp.ge.s32.totalorder %s1933_s18, 4  }
 0x252   :  { %18 = sbr.rel (!%p16_p10) target bundleno = 11 (0xb), region = 85 }
 0x257   :  { %1070 = vsyncpa [#allocation3], 1 }
 0x258   :  { %1072 = vsyncpa [#allocation3 + $0x1], 1 }
 0x259   :  { %1073 = vsyncpa [#allocation4], 1 }
 0x25a   :  { %1075 = vsyncpa [#allocation4 + $0x1], 1 }
 0x25b   :  { %1076 = vsyncpa [#allocation6], 1 }

</bundles_post_ra>
